<compile_context>
chip_gen: v7x
topology: tpu7x:2x2x1
jax: 0.10.0
libtpu: 0.0.40
codegen_flags: <defaults>
</compile_context>

<pallas_src>
import functools

import jax
import jax.numpy as jnp
from jax.experimental import pallas as pl
from jax.experimental.pallas import tpu as pltpu


def _make_mlp_soh_kernel(num_layers: int, bt: int, L: int):
    """num_layers = number of hidden (Linear+ReLU) layers (>= 1)."""
    inv_L = 1.0 / L

    def kernel(x_ref, *refs):
        o_ref = refs[-1]
        p = refs[:-1]  # w0, b0, ..., w_{n-1}, b_{n-1}, w_out_row, b_out

        h = x_ref[...]                          # (rows, D) bf16
        h_f32 = None
        for i in range(num_layers):
            w = p[2 * i][...]                   # (d_in, H)  bf16
            b = p[2 * i + 1][...]               # (1, H)     f32
            acc = jnp.dot(h, w, preferred_element_type=jnp.float32) + b
            h_f32 = jnp.maximum(acc, 0.0)       # bias + ReLU in f32 (VPU)
            if i + 1 < num_layers:
                h = h_f32.astype(jnp.bfloat16)  # bf16 operand for next MXU pass

        # Sequence mean commuted ahead of the final Linear:
        #   mean_L(h @ W_out + b_out) == (mean_L h) @ W_out + b_out
        # The mean is a f32 per-batch sublane-group reduction (no pool matmul).
        H = h_f32.shape[-1]
        h_mean = jnp.sum(h_f32.reshape(bt, L, H), axis=1) * inv_L   # (bt, H) f32

        w_out = p[2 * num_layers][...]          # (1, H) f32 (final weight, transposed)
        b_out = p[2 * num_layers + 1][...]      # (1, 1) f32
        # (H -> 1) contraction on VPU/XLU; avoids a lane-width-1 MXU matmul.
        o_ref[...] = jnp.sum(h_mean * w_out, axis=-1, keepdims=True) + b_out

    return kernel


@functools.lru_cache(maxsize=1)
def _tpu_budget():
    """(vmem_limit_bytes, num TensorCores per chip) with safe fallbacks."""
    vmem_cap = 64 << 20                         # conservative default (v7x per-TC)
    num_tc = 1
    try:
        vmem_cap = int(pltpu.get_tpu_info().vmem_capacity_bytes)
    except Exception:
        pass
    try:
        kind = jax.devices()[0].device_kind.lower()
        if "v7" in kind:                        # v7x: 2 TCs/chip, 64 MiB VMEM per TC
            num_tc = 2
            vmem_cap = min(vmem_cap, 64 << 20)
    except Exception:
        pass
    vmem_limit = min(100 << 20, (vmem_cap * 4) // 5)
    return int(vmem_limit), num_tc


def _max_rows_for_budget(D, H, weight_bytes, vmem_limit):
    """Largest activation-row count per grid step that fits the VMEM budget."""
    # Per-row bytes in flight: double-buffered bf16 x tile + f32 accumulator
    # + bf16 activation for the next dot.
    per_row = 2 * (D * 2) + H * 4 + H * 2
    avail = vmem_limit - weight_bytes - (2 << 20)        # headroom (out, temps)
    max_rows = max(avail // (2 * per_row), 8)            # 2x safety for temps
    cap = 4096 if vmem_limit >= (80 << 20) else 1024     # generation-aware cap
    return int(min(max_rows, cap))


def _plan_tiling(B, L, max_rows, num_tc):
    """Pick (bt, n_tiles); padded batch = bt * n_tiles."""
    # Multi-tile blocks: bt % 8 == 0 and bt*L % 16 == 0 (bf16 sublane packing).
    align = 8 if L % 2 == 0 else 16
    if B * L <= max_rows and (num_tc <= 1 or B < 2 * align):
        return B, 1                      # single block: dims equal array dims
    bt_cap = max(1, max_rows // L)
    bt = max(align, (bt_cap // align) * align)
    # Multi-TC chips: prefer >= num_tc tiles so "parallel" can shard them.
    while num_tc > 1 and -(-B // bt) < num_tc and bt > align:
        bt = max(align, ((bt // 2) // align) * align)
    n_tiles = -(-B // bt)
    return bt, n_tiles


def init_mlp_soh_params(key, input_dim, hidden_dim, num_layers):
    """Deterministic init mimicking nn.Linear default (uniform +-1/sqrt(fan_in)).
    Weights stored (in_features, out_features); biases (out_features,)."""
    dims = [input_dim] + [hidden_dim] * num_layers + [1]
    params = []
    for d_in, d_out in zip(dims[:-1], dims[1:]):
        key, kw, kb = jax.random.split(key, 3)
        bound = 1.0 / (d_in ** 0.5)
        w = jax.random.uniform(kw, (d_in, d_out), jnp.float32, -bound, bound)
        b = jax.random.uniform(kb, (d_out,), jnp.float32, -bound, bound)
        params.append((w, b))
    return tuple(params)


@jax.jit
def mlp_soh_forward(x, params):
    """x: (B, L, input_dim) f32.  params: ((w, b), ...); last pair = Linear(H, 1)."""
    B, L, D = x.shape
    num_layers = len(params) - 1
    assert num_layers >= 1, "MLP_SOH needs at least one hidden layer"
    H = params[0][0].shape[1]

    # bf16 MXU operands for hidden-layer weights; biases / output layer stay f32.
    kern_params = []
    weight_bytes = 0
    for w, b in params[:-1]:
        kern_params.append(w.astype(jnp.bfloat16))
        kern_params.append(b.reshape(1, -1).astype(jnp.float32))
        weight_bytes += w.size * 2 + b.size * 4
    w_out, b_out = params[-1]
    kern_params.append(w_out.reshape(1, -1).astype(jnp.float32))   # (1, H)
    kern_params.append(b_out.reshape(1, 1).astype(jnp.float32))    # (1, 1)
    weight_bytes += w_out.size * 4 + b_out.size * 4

    vmem_limit, num_tc = _tpu_budget()
    max_rows = _max_rows_for_budget(D, H, weight_bytes, vmem_limit)
    bt, n_tiles = _plan_tiling(B, L, max_rows, num_tc)
    B_pad = bt * n_tiles
    rows = bt * L

    x2d = x.reshape(B * L, D).astype(jnp.bfloat16)
    if B_pad != B:                               # pad instead of bt=B fallback
        x2d = jnp.pad(x2d, ((0, (B_pad - B) * L), (0, 0)))

    in_specs = [pl.BlockSpec((rows, D), lambda i: (i, 0))]          # activation tile
    # Grid-invariant operands: constant index_map + single buffering.
    in_specs += [
        pl.BlockSpec(t.shape, lambda i: (0, 0), pipeline_mode=pl.Buffered(1))
        for t in kern_params
    ]

    out = pl.pallas_call(
        _make_mlp_soh_kernel(num_layers, bt, L),
        out_shape=jax.ShapeDtypeStruct((B_pad, 1), jnp.float32),
        grid_spec=pltpu.PrefetchScalarGridSpec(
            num_scalar_prefetch=0,
            grid=(n_tiles,),
            in_specs=in_specs,
            out_specs=pl.BlockSpec((bt, 1), lambda i: (i, 0)),
        ),
        compiler_params=pltpu.CompilerParams(
            dimension_semantics=("parallel",),
            vmem_limit_bytes=vmem_limit,
        ),
    )(x2d, *kern_params)
    return out[:B]


def mlp_soh_reference(x, params):
    """Pure-JAX f32 reference matching the PyTorch forward exactly."""
    h = x
    for w, b in params[:-1]:
        h = jnp.maximum(jnp.einsum("bld,dh->blh", h, w) + b, 0.0)
    w, b = params[-1]
    y = jnp.einsum("blh,ho->blo", h, w) + b       # (B, L, 1)
    return jnp.mean(y, axis=1)                    # (B, 1)


def mlp_soh_reference_bf16(x, params):
    """Reference with the same bf16-operand / f32-accumulate numerics as the kernel."""
    h = x.astype(jnp.bfloat16)
    h_f32 = None
    for w, b in params[:-1]:
        acc = jnp.einsum("bld,dh->blh", h, w.astype(jnp.bfloat16),
                         preferred_element_type=jnp.float32) + b
        h_f32 = jnp.maximum(acc, 0.0)
        h = h_f32.astype(jnp.bfloat16)
    w, b = params[-1]
    h_mean = jnp.mean(h_f32, axis=1)              # (B, H) f32
    return h_mean @ w + b                         # (B, 1)


if __name__ == "__main__":
    # Small shapes consistent with the module: x ~ (batch, seq, input_dim)
    B, L, input_dim, hidden_dim, num_layers = 2, 8, 16, 32, 2

    key = jax.random.PRNGKey(0)
    kx, kp = jax.random.split(key)
    x = jax.random.normal(kx, (B, L, input_dim), dtype=jnp.float32)
    params = init_mlp_soh_params(kp, input_dim, hidden_dim, num_layers)

    out = jax.block_until_ready(mlp_soh_forward(x, params))
    assert out.shape == (B, 1), out.shape

    ref_bf16 = mlp_soh_reference_bf16(x, params)   # same bf16/f32-acc numerics
    ref_f32 = mlp_soh_reference(x, params)         # PyTorch-style full f32
    assert jnp.allclose(out, ref_bf16, atol=1e-4, rtol=1e-4), (out, ref_bf16)
    assert jnp.allclose(out, ref_f32, atol=5e-2, rtol=5e-2), (out, ref_f32)

    print("KERNEL_OK")
</pallas_src>

<mosaic_0001>
module attributes {stable_mosaic.version = 11 : i64} {
  func.func @kernel(%arg0: i32, %arg1: memref<16x16xbf16, #tpu.memory_space<vmem>>, %arg2: memref<16x32xbf16, #tpu.memory_space<vmem>>, %arg3: memref<1x32xf32, #tpu.memory_space<vmem>>, %arg4: memref<32x32xbf16, #tpu.memory_space<vmem>>, %arg5: memref<1x32xf32, #tpu.memory_space<vmem>>, %arg6: memref<1x32xf32, #tpu.memory_space<vmem>>, %arg7: memref<1x1xf32, #tpu.memory_space<vmem>>, %arg8: memref<2x1xf32, #tpu.memory_space<vmem>>) attributes {dimension_semantics = [#tpu.dimension_semantics<parallel>], iteration_bounds = array<i64: 1>, scalar_prefetch = 0 : i64, scratch_operands = 0 : i64, tpu.core_type = #tpu.core_type<tc>, window_params = [{transform_indices = @transform_0, window_bounds = array<i64: 16, 16>}, {pipeline_mode = #tpu.pipeline_mode<synchronous>, transform_indices = @transform_1, window_bounds = array<i64: 16, 32>}, {pipeline_mode = #tpu.pipeline_mode<synchronous>, transform_indices = @transform_2, window_bounds = array<i64: 1, 32>}, {pipeline_mode = #tpu.pipeline_mode<synchronous>, transform_indices = @transform_3, window_bounds = array<i64: 32, 32>}, {pipeline_mode = #tpu.pipeline_mode<synchronous>, transform_indices = @transform_4, window_bounds = array<i64: 1, 32>}, {pipeline_mode = #tpu.pipeline_mode<synchronous>, transform_indices = @transform_5, window_bounds = array<i64: 1, 32>}, {pipeline_mode = #tpu.pipeline_mode<synchronous>, transform_indices = @transform_6, window_bounds = array<i64: 1, 1>}, {transform_indices = @transform_7, window_bounds = array<i64: 2, 1>}]} {
    %c0 = arith.constant 0 : index
    %c0_0 = arith.constant 0 : index
    %0 = vector.load %arg1[%c0, %c0_0] : memref<16x16xbf16, #tpu.memory_space<vmem>>, vector<16x16xbf16>
    %c0_1 = arith.constant 0 : index
    %c0_2 = arith.constant 0 : index
    %1 = vector.load %arg2[%c0_1, %c0_2] : memref<16x32xbf16, #tpu.memory_space<vmem>>, vector<16x32xbf16>
    %c0_3 = arith.constant 0 : index
    %c0_4 = arith.constant 0 : index
    %2 = vector.load %arg3[%c0_3, %c0_4] : memref<1x32xf32, #tpu.memory_space<vmem>>, vector<1x32xf32>
    %cst = arith.constant dense<0.000000e+00> : vector<16x32xf32>
    %3 = tpu.matmul %0, %1, %cst {dimension_numbers = #tpu.dot_dimension_numbers<[1], [0], [0], [1], [0, 0, 1, 1], [], []>} : vector<16x16xbf16>, vector<16x32xbf16>, vector<16x32xf32> -> vector<16x32xf32>
    %4 = vector.broadcast %2 : vector<1x32xf32> to vector<16x32xf32>
    %5 = arith.addf %3, %4 : vector<16x32xf32>
    %cst_5 = arith.constant 0.000000e+00 : f32
    %6 = vector.broadcast %cst_5 : f32 to vector<16x32xf32>
    %7 = arith.maximumf %5, %6 : vector<16x32xf32>
    %8 = arith.truncf %7 : vector<16x32xf32> to vector<16x32xbf16>
    %c0_6 = arith.constant 0 : index
    %c0_7 = arith.constant 0 : index
    %9 = vector.load %arg4[%c0_6, %c0_7] : memref<32x32xbf16, #tpu.memory_space<vmem>>, vector<32x32xbf16>
    %c0_8 = arith.constant 0 : index
    %c0_9 = arith.constant 0 : index
    %10 = vector.load %arg5[%c0_8, %c0_9] : memref<1x32xf32, #tpu.memory_space<vmem>>, vector<1x32xf32>
    %cst_10 = arith.constant dense<0.000000e+00> : vector<16x32xf32>
    %11 = tpu.matmul %8, %9, %cst_10 {dimension_numbers = #tpu.dot_dimension_numbers<[1], [0], [0], [1], [0, 0, 1, 1], [], []>} : vector<16x32xbf16>, vector<32x32xbf16>, vector<16x32xf32> -> vector<16x32xf32>
    %12 = vector.broadcast %10 : vector<1x32xf32> to vector<16x32xf32>
    %13 = arith.addf %11, %12 : vector<16x32xf32>
    %cst_11 = arith.constant 0.000000e+00 : f32
    %14 = vector.broadcast %cst_11 : f32 to vector<16x32xf32>
    %15 = arith.maximumf %13, %14 : vector<16x32xf32>
    %16 = vector.shape_cast %15 : vector<16x32xf32> to vector<2x8x32xf32>
    %cst_12 = arith.constant dense<0.000000e+00> : vector<2x32xf32>
    %17 = vector.multi_reduction <add>, %16, %cst_12 [1] : vector<2x8x32xf32> to vector<2x32xf32>
    %cst_13 = arith.constant 1.250000e-01 : f32
    %18 = vector.broadcast %cst_13 : f32 to vector<2x32xf32>
    %19 = arith.mulf %17, %18 : vector<2x32xf32>
    %c0_14 = arith.constant 0 : index
    %c0_15 = arith.constant 0 : index
    %20 = vector.load %arg6[%c0_14, %c0_15] : memref<1x32xf32, #tpu.memory_space<vmem>>, vector<1x32xf32>
    %c0_16 = arith.constant 0 : index
    %c0_17 = arith.constant 0 : index
    %21 = vector.load %arg7[%c0_16, %c0_17] : memref<1x1xf32, #tpu.memory_space<vmem>>, vector<1x1xf32>
    %22 = vector.broadcast %20 : vector<1x32xf32> to vector<2x32xf32>
    %23 = arith.mulf %19, %22 : vector<2x32xf32>
    %cst_18 = arith.constant dense<0.000000e+00> : vector<2xf32>
    %24 = vector.multi_reduction <add>, %23, %cst_18 [1] : vector<2x32xf32> to vector<2xf32>
    %25 = vector.shape_cast %24 : vector<2xf32> to vector<2x1xf32>
    %26 = vector.broadcast %21 : vector<1x1xf32> to vector<2x1xf32>
    %27 = arith.addf %25, %26 : vector<2x1xf32>
    %c0_19 = arith.constant 0 : index
    %c0_20 = arith.constant 0 : index
    %28 = vector.load %arg8[%c0_19, %c0_20] : memref<2x1xf32, #tpu.memory_space<vmem>>, vector<2x1xf32>
    tpu.vector_store %arg8[%c0_19, %c0_20], %27 {strides = array<i32>} : memref<2x1xf32, #tpu.memory_space<vmem>>, vector<2x1xf32>,
    return
  }
  func.func @transform_0(%arg0: i32) -> (i32, i32) {
    %c0_i32 = arith.constant 0 : i32
    %c0_i32_0 = arith.constant 0 : i32
    return %arg0, %c0_i32 : i32, i32
  }
  func.func @transform_1(%arg0: i32) -> (i32, i32) {
    %c0_i32 = arith.constant 0 : i32
    %c0_i32_0 = arith.constant 0 : i32
    %c0_i32_1 = arith.constant 0 : i32
    return %c0_i32, %c0_i32_0 : i32, i32
  }
  func.func @transform_2(%arg0: i32) -> (i32, i32) {
    %c0_i32 = arith.constant 0 : i32
    %c0_i32_0 = arith.constant 0 : i32
    %c0_i32_1 = arith.constant 0 : i32
    return %c0_i32, %c0_i32_0 : i32, i32
  }
  func.func @transform_3(%arg0: i32) -> (i32, i32) {
    %c0_i32 = arith.constant 0 : i32
    %c0_i32_0 = arith.constant 0 : i32
    %c0_i32_1 = arith.constant 0 : i32
    return %c0_i32, %c0_i32_0 : i32, i32
  }
  func.func @transform_4(%arg0: i32) -> (i32, i32) {
    %c0_i32 = arith.constant 0 : i32
    %c0_i32_0 = arith.constant 0 : i32
    %c0_i32_1 = arith.constant 0 : i32
    return %c0_i32, %c0_i32_0 : i32, i32
  }
  func.func @transform_5(%arg0: i32) -> (i32, i32) {
    %c0_i32 = arith.constant 0 : i32
    %c0_i32_0 = arith.constant 0 : i32
    %c0_i32_1 = arith.constant 0 : i32
    return %c0_i32, %c0_i32_0 : i32, i32
  }
  func.func @transform_6(%arg0: i32) -> (i32, i32) {
    %c0_i32 = arith.constant 0 : i32
    %c0_i32_0 = arith.constant 0 : i32
    %c0_i32_1 = arith.constant 0 : i32
    return %c0_i32, %c0_i32_0 : i32, i32
  }
  func.func @transform_7(%arg0: i32) -> (i32, i32) {
    %c0_i32 = arith.constant 0 : i32
    %c0_i32_0 = arith.constant 0 : i32
    return %arg0, %c0_i32 : i32, i32
  }
}

</mosaic_0001>

<bundles_post_ra>
// kernel: mlp_soh_forward.1
= control target key start
LH: loop header
LB: loop body
LE: loop exit
PB: predicated region body
PF: predicated region fallthrough
CT: control target
= control target key end

     0   :  { %v253_v0 = vmov 0.0   ;;  %vm254_vm0 = vmmov 0   ;;  %vm51_vm1 = vcmask 130048   ;;  %vm122_vm2 = vcmask 261120   ;;  %s325_s1 = inlined_call_operand.vmem [shape: bf16[16,32], index: 1, kind: input, shape index: {}]   ;;  %s326_s0 = inlined_call_operand.vmem [shape: bf16[16,16], index: 0, kind: input, shape index: {}]   ;;  %s327_s3 = inlined_call_operand.vmem [shape: bf16[32,32], index: 3, kind: input, shape index: {}]   ;;  %s328_s2 = inlined_call_operand.vmem [shape: f32[1,32], index: 2, kind: input, shape index: {}]   ;;  %s329_s6 = inlined_call_operand.<no memory space> [shape: f32[1,1], index: 6, kind: input, shape index: {}]   ;;  %s330_s4 = inlined_call_operand.vmem [shape: f32[1,32], index: 4, kind: input, shape index: {}]   ;;  %s331_s5 = inlined_call_operand.vmem [shape: f32[1,32], index: 5, kind: input, shape index: {}]   ;;  %s332_s7 = inlined_call_operand.vmem [shape: f32[2,1], index: 7, kind: output, shape index: {}]  }
   0x1   :  { %233 = vmatprep.subr.bf16.mxu0 %v253_v0  ;;  %v249_v1 = vld [vmem:[%s325_s1] sm:$0xff]   ;;  %235 = vmatprep.mubr.msk.bf16.mxu0 %vm254_vm0, %v253_v0  ;;  %v252_v4 = vld [vmem:[%s327_s3 + $0x8] sm:$0xff]   ;;  %v12_v15 = vstv %s329_s6  ;;  %vm198_vm3 = vcmask 1041409   ;;  %vm201_vm4 = vcmask 254976   ;;  %vm212_vm5 = vcmask 1024  }
   0x2   :  { %v250_v2 = vld [vmem:[%s326_s0] sm:$0xff]   ;;  %239 = vmatprep.subr.bf16.mxu1 %v253_v0  ;;  %243 = vmatprep.mubr.msk.bf16.mxu1 %vm254_vm0, %v253_v0  ;;  %13 = vst [vmem:[#allocation2] sm:$0x1] %v12_v15 }
   0x3   :  { %234 = vmatpush3.bf16.msra.mxu0 %v249_v1  ;;  %v251_v3 = vld [vmem:[%s327_s3] sm:$0xff]  }
   0x4   :  { %240 = vmatpush3.bf16.msra.mxu1 %v251_v3  ;;  %v218_v5 = vld [vmem:[%s328_s2] ss:$0 sm:$0xff] }
   0x5   :  { %241 = vmatprep.subr.bf16.mxu1 %v253_v0  ;;  %v222_v16 = vld [vmem:[%s330_s4] ss:$0 sm:$0xff] }
   0x6   :  { %236 = vmatmul.mubr.msk.bf16.vlgmr.msra.gmra.mrb[0].mxu0 %vm51_vm1, %v250_v2  ;;  %v226_v41 = vld [vmem:[%s331_s5] ss:$0 sm:$0xff] }
   0x8   :  { %242 = vmatpush3.bf16.msra.mxu1 %v252_v4 }
   0x9   :  { %v227_v47 = vld [vmem:[#allocation2] ss:$0 sm:$0xff] }
  0xd9   :  { %v89_v6 = vpop.f32.mrb[0].mxu0 }
  0xda   :  { %v90_v7 = vadd.f32 %v218_v5, %v89_v6  ;;  %v237_v8 = vpop.f32.mrb[1].mxu0 }
  0xdb   :  { %v92_v9 = vpop.f32.mrb[2].mxu0 }
  0xdc   :  { %v93_v10 = vadd.f32 %v218_v5, %v92_v9  ;;  %v238_v11 = vpop.f32.mrb[3].mxu0  ;;  %v96_v12 = vmax.f32 %v90_v7, 0.0 }
  0xde   :  { %v97_v13 = vmax.f32 %v93_v10, 0.0 }
  0xe0   :  { %v98_v14 = vpack.c.bf16 %v97_v13, %v96_v12 }
  0xe2   :  { %244 = vmatmul.mubr.msk.bf16.vlgmr.msra.gmra.mrb[0].mxu1 %vm122_vm2, %v98_v14 }
 0x1b5   :  { %v160_v17 = vpop.f32.mrb[0].mxu1 }
 0x1b6   :  { %v161_v18 = vadd.f32 %v222_v16, %v160_v17  ;;  %v245_v19 = vpop.f32.mrb[1].mxu1 }
 0x1b7   :  { %v163_v20 = vpop.f32.mrb[2].mxu1 }
 0x1b8   :  { %v167_v21 = vmax.f32 %v161_v18, 0.0  ;;  %v164_v22 = vadd.f32 %v222_v16, %v163_v20  ;;  %v246_v23 = vpop.f32.mrb[3].mxu1 }
 0x1ba   :  { %v169_v24 = vsel %vm122_vm2, %v167_v21, 0.0  ;;  %v168_v25 = vmax.f32 %v164_v22, 0.0 }
 0x1bb   :  { %v170_v26 = vrot.slane %v169_v24, 4 }
 0x1bc   :  { %v176_v27 = vsel %vm122_vm2, %v168_v25, 0.0 }
 0x1bd   :  { %v171_v28 = vadd.f32 %v170_v26, %v169_v24  ;;  %v177_v29 = vrot.slane %v176_v27, 4 }
 0x1bf   :  { %v172_v30 = vrot.slane %v171_v28, 2  ;;  %v178_v31 = vadd.f32 %v177_v29, %v176_v27 }
 0x1c1   :  { %v173_v32 = vadd.f32 %v172_v30, %v171_v28  ;;  %v179_v33 = vrot.slane %v178_v31, 2 }
 0x1c3   :  { %v174_v34 = vrot.slane %v173_v32, 1  ;;  %v180_v35 = vadd.f32 %v179_v33, %v178_v31 }
 0x1c5   :  { %v181_v36 = vrot.slane %v180_v35, 1  ;;  %v175_v37 = vadd.f32 %v174_v34, %v173_v32 }
 0x1c7   :  { %v182_v38 = vadd.f32 %v181_v36, %v180_v35  ;;  %v183_v39 = vmul.f32 0.125, %v175_v37 }
 0x1c9   :  { %v184_v40 = vmul.f32 0.125, %v182_v38  ;;  %v193_v43 = vmul.f32 %v226_v41, %v183_v39 }
 0x1cb   :  { %v194_v42 = vmul.f32 %v226_v41, %v184_v40 }
 0x1cd   :  { %v197_v44 = vrot.slane %v194_v42, 7 }
 0x1cf   :  { %v199_v45 = vsel %vm198_vm3, %v197_v44, %v193_v43 }
 0x1d0   :  { %v202_v46 = vsel %vm201_vm4, %v199_v45, 0.0 }
 0x1d1   :  { %203 = vadd.xlane.f32.xlu0 %v202_v46 }
 0x25e   :  { %v204_v48 = vpop.xlane.xlu0 %203 }
 0x25f   :  { %v211_v49 = vadd.f32 %v227_v47, %v204_v48 }
 0x261   :  { %213 = vst.msk [vmem:[%s332_s7] sm:$0x3] %vm212_vm5, %v211_v49 }

</bundles_post_ra>
